<compile_context>
chip_gen: v5e
topology: v5e:2x2
jax: 0.10.0
libtpu: 0.0.40
codegen_flags: <defaults>
</compile_context>

<pallas_src>
import jax
import jax.numpy as jnp
from jax.experimental import pallas as pl
from jax.experimental.pallas import tpu as pltpu  # noqa: F401  (kept for future tiled/SMEM variants)

# POST_PROCESSING config (deterministic, in-script; mirrors model_cfg fields)
TRANSLATION_NOISE_MAX = 0.10
SIZE_NOISE_MAX = 0.05
HEADING_NOISE_MAX = 0.02
RECALL_THRESH_LIST = (0.3, 0.5, 0.7)


def _dummy_post_kernel(gt_ref, noise_ref, out_ref, gt_count_ref):
    """Fused Dummy post-processing, single invocation over the whole slab.

    gt_ref       : (B, N, 8) f32  gt boxes (native layout, no transposes)
    noise_ref    : (B, N, 7) f32  uniform(0, 1) noise
    out_ref      : (B, N, 8) f32  merged output: cols 0:7 noised pred boxes,
                                  col 7 label passthrough (cast in wrapper)
    gt_count_ref : (1, 1)    i32  total nonzero-gt-box count over the batch
    """
    # Static Ref slices (free views) + Python-scalar amplitudes; nothing is
    # captured as a constant array.
    out_ref[:, :, 0:3] = gt_ref[:, :, 0:3] + noise_ref[:, :, 0:3] * TRANSLATION_NOISE_MAX
    out_ref[:, :, 3:6] = gt_ref[:, :, 3:6] + noise_ref[:, :, 3:6] * SIZE_NOISE_MAX
    out_ref[:, :, 6:7] = gt_ref[:, :, 6:7] + noise_ref[:, :, 6:7] * HEADING_NOISE_MAX
    out_ref[:, :, 7:8] = gt_ref[:, :, 7:8]          # label channel passthrough

    # Recall 'gt' count, fused so gt_boxes is read from HBM only once.
    # Per batch element: count = (index of last row whose 8-col sum != 0) + 1,
    # exactly the reference's trailing-zero trim; then summed over the batch.
    B, N, _ = gt_ref.shape
    row_sum = jnp.sum(gt_ref[...], axis=-1)                            # (B, N)
    idx = jax.lax.broadcasted_iota(jnp.int32, (B, N), 1) + 1           # 1..N
    counts = jnp.max(jnp.where(row_sum != 0.0, idx, 0),
                     axis=-1, keepdims=True)                           # (B, 1)
    gt_count_ref[...] = jnp.sum(counts, axis=0, keepdims=True)         # (1, 1)


def dummy_post_processing(gt_boxes, noise):
    """gt_boxes: (B, N, 8) f32, noise: (B, N, 7) uniform(0,1) f32."""
    B, N, C = gt_boxes.shape
    assert C == 8 and noise.shape == (B, N, 7)

    out, gt_count = pl.pallas_call(
        _dummy_post_kernel,
        out_shape=(
            jax.ShapeDtypeStruct((B, N, 8), jnp.float32),   # merged boxes+label slab
            jax.ShapeDtypeStruct((1, 1), jnp.int32),        # fused recall 'gt' count
        ),
        # grid=(): whole (tiny) slab resident in VMEM, one invocation.
        # For large N, introduce a grid over N with lane tiles that are
        # multiples of 128 (>=512) and dimension_semantics=("parallel",)
        # (shards across v7x's 2 TensorCores); raise vmem_limit_bytes on v5e.
    )(gt_boxes, noise)

    pred_boxes = out[:, :, :7]                               # (B, N, 7)
    pred_labels = out[:, :, 7].astype(jnp.int32)             # (B, N)  (ref uses int64; int32 here)
    pred_scores = jnp.ones((B, N), jnp.float32)              # constant -> wrapper
    return pred_boxes, pred_scores, pred_labels, gt_count[0, 0]


def generate_recall_record(gt_count_device, thresh_list=RECALL_THRESH_LIST):
    """Recall bookkeeping (mirrors Dummy.generate_recall_record 'gt' count).

    'gt' is kept as a device scalar (no blocking device_get here); callers
    convert with int(...) only when they actually need the Python value.
    """
    recall_dict = {'gt': gt_count_device}
    for t in thresh_list:
        recall_dict['roi_%s' % str(t)] = 0
        recall_dict['rcnn_%s' % str(t)] = 0
    # TODO(synk): rotated 3D-IoU (iou3d_nms_utils.boxes_iou3d_gpu, CUDA
    # polygon-clipping kernel) has no clean Pallas equivalent; roi_/rcnn_
    # threshold counts are left at 0.
    return recall_dict


def dummy_forward_test(batch_dict):
    """Equivalent of Dummy.forward(...) in eval mode."""
    pred_dicts = []
    if 'gt_boxes' not in batch_dict:
        return pred_dicts, {}
    gt_boxes = batch_dict['gt_boxes']
    noise = batch_dict['noise']
    pred_boxes, pred_scores, pred_labels, gt_count = dummy_post_processing(gt_boxes, noise)
    for b in range(batch_dict['batch_size']):
        pred_dicts.append({
            'pred_boxes': pred_boxes[b],
            'pred_scores': pred_scores[b],
            'pred_labels': pred_labels[b],
        })
    recall_dict = generate_recall_record(gt_count)
    return pred_dicts, recall_dict


if __name__ == "__main__":
    import numpy as np

    key = jax.random.PRNGKey(0)
    B, N = 2, 8

    k_box, k_lbl, k_noise = jax.random.split(key, 3)
    box_params = jax.random.uniform(k_box, (B, N, 7), dtype=jnp.float32,
                                    minval=-5.0, maxval=5.0)
    labels = jax.random.randint(k_lbl, (B, N, 1), 1, 4).astype(jnp.float32)
    gt_boxes = jnp.concatenate([box_params, labels], axis=-1)   # (B, N, 8)

    # uniform(0, 1) noise consumed inside the kernel (scaled per channel there)
    noise = jax.random.uniform(k_noise, (B, N, 7), dtype=jnp.float32)

    batch_dict = {'batch_size': B, 'gt_boxes': gt_boxes, 'noise': noise}

    pred_dicts, recall_dict = dummy_forward_test(batch_dict)
    for d in pred_dicts:
        jax.block_until_ready(d['pred_boxes'])
        jax.block_until_ready(d['pred_scores'])
        jax.block_until_ready(d['pred_labels'])
    jax.block_until_ready(recall_dict['gt'])

    # Sanity checks against the reference semantics.
    scale = np.asarray((TRANSLATION_NOISE_MAX,) * 3 + (SIZE_NOISE_MAX,) * 3
                       + (HEADING_NOISE_MAX,), dtype=np.float32)
    gt_np = jax.device_get(gt_boxes)
    noise_np = jax.device_get(noise)
    for b in range(B):
        np.testing.assert_allclose(
            jax.device_get(pred_dicts[b]['pred_boxes']),
            gt_np[b, :, :7] + noise_np[b] * scale, rtol=1e-6, atol=1e-6)
        np.testing.assert_array_equal(
            jax.device_get(pred_dicts[b]['pred_labels']),
            gt_np[b, :, 7].astype(np.int32))
        np.testing.assert_array_equal(
            jax.device_get(pred_dicts[b]['pred_scores']),
            np.ones((N,), dtype=np.float32))
    assert int(recall_dict['gt']) == B * N

    print("KERNEL_OK")
</pallas_src>

<mosaic_0001>
module attributes {stable_mosaic.version = 11 : i64} {
  func.func @_dummy_post_kernel(%arg0: memref<2x8x8xf32, #tpu.memory_space<vmem>>, %arg1: memref<2x8x7xf32, #tpu.memory_space<vmem>>, %arg2: memref<2x8x8xf32, #tpu.memory_space<vmem>>, %arg3: memref<1x1xi32, #tpu.memory_space<vmem>>) attributes {dimension_semantics = [], scalar_prefetch = 0 : i64, scratch_operands = 0 : i64, tpu.core_type = #tpu.core_type<tc>} {
    %c0 = arith.constant 0 : index
    %c0_0 = arith.constant 0 : index
    %c0_1 = arith.constant 0 : index
    %0 = vector.load %arg0[%c0, %c0_0, %c0_1] : memref<2x8x8xf32, #tpu.memory_space<vmem>>, vector<2x8x3xf32>
    %c0_2 = arith.constant 0 : index
    %c0_3 = arith.constant 0 : index
    %c0_4 = arith.constant 0 : index
    %1 = vector.load %arg1[%c0_2, %c0_3, %c0_4] : memref<2x8x7xf32, #tpu.memory_space<vmem>>, vector<2x8x3xf32>
    %cst = arith.constant 1.000000e-01 : f32
    %2 = vector.broadcast %cst : f32 to vector<2x8x3xf32>
    %3 = arith.mulf %1, %2 : vector<2x8x3xf32>
    %4 = arith.addf %0, %3 : vector<2x8x3xf32>
    %c0_5 = arith.constant 0 : index
    %c0_6 = arith.constant 0 : index
    %c0_7 = arith.constant 0 : index
    %5 = vector.load %arg2[%c0_5, %c0_6, %c0_7] : memref<2x8x8xf32, #tpu.memory_space<vmem>>, vector<2x8x3xf32>
    tpu.vector_store %arg2[%c0_5, %c0_6, %c0_7], %4 {strides = array<i32>} : memref<2x8x8xf32, #tpu.memory_space<vmem>>, vector<2x8x3xf32>,
    %c0_8 = arith.constant 0 : index
    %c0_9 = arith.constant 0 : index
    %c3 = arith.constant 3 : index
    %6 = vector.load %arg0[%c0_8, %c0_9, %c3] : memref<2x8x8xf32, #tpu.memory_space<vmem>>, vector<2x8x3xf32>
    %c0_10 = arith.constant 0 : index
    %c0_11 = arith.constant 0 : index
    %c3_12 = arith.constant 3 : index
    %7 = vector.load %arg1[%c0_10, %c0_11, %c3_12] : memref<2x8x7xf32, #tpu.memory_space<vmem>>, vector<2x8x3xf32>
    %cst_13 = arith.constant 5.000000e-02 : f32
    %8 = vector.broadcast %cst_13 : f32 to vector<2x8x3xf32>
    %9 = arith.mulf %7, %8 : vector<2x8x3xf32>
    %10 = arith.addf %6, %9 : vector<2x8x3xf32>
    %c0_14 = arith.constant 0 : index
    %c0_15 = arith.constant 0 : index
    %c3_16 = arith.constant 3 : index
    %11 = vector.load %arg2[%c0_14, %c0_15, %c3_16] : memref<2x8x8xf32, #tpu.memory_space<vmem>>, vector<2x8x3xf32>
    tpu.vector_store %arg2[%c0_14, %c0_15, %c3_16], %10 {strides = array<i32>} : memref<2x8x8xf32, #tpu.memory_space<vmem>>, vector<2x8x3xf32>,
    %c0_17 = arith.constant 0 : index
    %c0_18 = arith.constant 0 : index
    %c6 = arith.constant 6 : index
    %12 = vector.load %arg0[%c0_17, %c0_18, %c6] : memref<2x8x8xf32, #tpu.memory_space<vmem>>, vector<2x8x1xf32>
    %c0_19 = arith.constant 0 : index
    %c0_20 = arith.constant 0 : index
    %c6_21 = arith.constant 6 : index
    %13 = vector.load %arg1[%c0_19, %c0_20, %c6_21] : memref<2x8x7xf32, #tpu.memory_space<vmem>>, vector<2x8x1xf32>
    %cst_22 = arith.constant 2.000000e-02 : f32
    %14 = vector.broadcast %cst_22 : f32 to vector<2x8x1xf32>
    %15 = arith.mulf %13, %14 : vector<2x8x1xf32>
    %16 = arith.addf %12, %15 : vector<2x8x1xf32>
    %c0_23 = arith.constant 0 : index
    %c0_24 = arith.constant 0 : index
    %c6_25 = arith.constant 6 : index
    %17 = vector.load %arg2[%c0_23, %c0_24, %c6_25] : memref<2x8x8xf32, #tpu.memory_space<vmem>>, vector<2x8x1xf32>
    tpu.vector_store %arg2[%c0_23, %c0_24, %c6_25], %16 {strides = array<i32>} : memref<2x8x8xf32, #tpu.memory_space<vmem>>, vector<2x8x1xf32>,
    %c0_26 = arith.constant 0 : index
    %c0_27 = arith.constant 0 : index
    %c7 = arith.constant 7 : index
    %18 = vector.load %arg0[%c0_26, %c0_27, %c7] : memref<2x8x8xf32, #tpu.memory_space<vmem>>, vector<2x8x1xf32>
    %c0_28 = arith.constant 0 : index
    %c0_29 = arith.constant 0 : index
    %c7_30 = arith.constant 7 : index
    %19 = vector.load %arg2[%c0_28, %c0_29, %c7_30] : memref<2x8x8xf32, #tpu.memory_space<vmem>>, vector<2x8x1xf32>
    tpu.vector_store %arg2[%c0_28, %c0_29, %c7_30], %18 {strides = array<i32>} : memref<2x8x8xf32, #tpu.memory_space<vmem>>, vector<2x8x1xf32>,
    %c0_31 = arith.constant 0 : index
    %c0_32 = arith.constant 0 : index
    %c0_33 = arith.constant 0 : index
    %20 = vector.load %arg0[%c0_31, %c0_32, %c0_33] : memref<2x8x8xf32, #tpu.memory_space<vmem>>, vector<2x8x8xf32>
    %cst_34 = arith.constant dense<0.000000e+00> : vector<2x8xf32>
    %21 = vector.multi_reduction <add>, %20, %cst_34 [2] : vector<2x8x8xf32> to vector<2x8xf32>
    %22 = tpu.iota {dimensions = array<i32: 1>} : vector<2x8xi32>
    %c1_i32 = arith.constant 1 : i32
    %23 = vector.broadcast %c1_i32 : i32 to vector<2x8xi32>
    %24 = arith.addi %22, %23 : vector<2x8xi32>
    %cst_35 = arith.constant 0.000000e+00 : f32
    %25 = vector.broadcast %cst_35 : f32 to vector<2x8xf32>
    %26 = arith.cmpf one, %21, %25 : vector<2x8xf32>
    %c0_i32 = arith.constant 0 : i32
    %27 = vector.broadcast %c0_i32 : i32 to vector<2x8xi32>
    %28 = arith.select %26, %24, %27 : vector<2x8xi1>, vector<2x8xi32>
    %cst_36 = arith.constant dense<-2147483648> : vector<2xi32>
    %29 = vector.multi_reduction <maxsi>, %28, %cst_36 [1] : vector<2x8xi32> to vector<2xi32>
    %30 = vector.shape_cast %29 : vector<2xi32> to vector<2x1xi32>
    %cst_37 = arith.constant dense<0> : vector<1xi32>
    %31 = vector.multi_reduction <add>, %30, %cst_37 [0] : vector<2x1xi32> to vector<1xi32>
    %32 = vector.shape_cast %31 : vector<1xi32> to vector<1x1xi32>
    %c0_38 = arith.constant 0 : index
    %c0_39 = arith.constant 0 : index
    %33 = vector.load %arg3[%c0_38, %c0_39] : memref<1x1xi32, #tpu.memory_space<vmem>>, vector<1x1xi32>
    tpu.vector_store %arg3[%c0_38, %c0_39], %32 {strides = array<i32>} : memref<1x1xi32, #tpu.memory_space<vmem>>, vector<1x1xi32>,
    return
  }
}

</mosaic_0001>

<bundles_post_ra>
// kernel: tpu_custom_call.1
= control target key start
LH: loop header
LB: loop body
LE: loop exit
PB: predicated region body
PF: predicated region fallthrough
CT: control target
= control target key end

     0   :  { %9 = vsyncpa [#allocation3], 0  ;;  %vm55_vm0 = vcmask 64512   ;;  %v62_v1 = vlaneseq  ;;  %s263_s0 = inlined_call_operand.vmem [shape: f32[2,8,8], index: 0, kind: input, shape index: {}]   ;;  %s264_s1 = inlined_call_operand.vmem [shape: f32[2,8,7], index: 1, kind: input, shape index: {}]   ;;  %s265_s2 = inlined_call_operand.hbm [shape: f32[2,8,8], index: 2, kind: output, shape index: {0}]   ;;  %s266_s3 = inlined_call_operand.hbm [shape: s32[1,1], index: 3, kind: output, shape index: {1}]  }
   0x1   :  { %v234_v0 = vld [vmem:[%s263_s0] sm:$0xff] }
   0x2   :  { %10 = vsyncpa [#allocation5], 0  ;;  %v56_v2 = vsel %vm55_vm0, %v234_v0, 0.0  ;;  %v68_v3 = vshrl.u32 %v62_v1, 7  ;;  %v63_v4 = vand.u32 127, %v62_v1  ;;  %v240_v5 = vld [vmem:[%s263_s0 + $0x8] sm:$0xff] }
   0x3   :  { %57 = vadd.xlane.f32.xlu0 %v56_v2  ;;  %v59_v6 = vsel %vm55_vm0, %v240_v5, 0.0  ;;  %v206_v8 = vmov 0   ;;  %vm83_vm3 = vcmask 1041409   ;;  %vm85_vm4 = vcmask 58368   ;;  %v17_v26 = vld [vmem:[%s264_s1] sm:$0xff]  ;;  %v18_v27 = vld [vmem:[%s264_s1 + $0x8] sm:$0xff] }
   0x4   :  { %150 = vset.pattern.permute.xlu1 %v68_v3  ;;  %v64_v7 = vadd.s32 1, %v63_v4  ;;  %152 = vset.pattern.permute.xlu2 %v206_v8  ;;  %v19_v28 = vmul.f32 0.1, %v17_v26  ;;  %v20_v29 = vmul.f32 0.1, %v18_v27  ;;  %vm23_vm6 = vcmask 23552  }
   0x5   :  { %153 = vset.pattern.permute.xlu0 %v206_v8  ;;  %v30_v30 = vmul.f32 0.05, %v17_v26  ;;  %v31_v31 = vmul.f32 0.05, %v18_v27  ;;  %v41_v34 = vmul.f32 0.02, %v17_v26 }
   0x6   :  { %v21_v32 = vadd.f32 %v234_v0, %v19_v28  ;;  %v22_v33 = vadd.f32 %v240_v5, %v20_v29  ;;  %v42_v35 = vmul.f32 0.02, %v18_v27  ;;  %vm34_vm7 = vcmask 48152   ;;  %s207_s1 = smov [#allocation2]   ;;  %s117_s22 = sshll.u32 %s265_s2, 4  ;;  %s118_s22 = int_to_ptr.hbm [resolvable:$true] %s117_s22 }
   0x7   :  { %v32_v36 = vadd.f32 %v234_v0, %v30_v30  ;;  %v33_v37 = vadd.f32 %v240_v5, %v31_v31  ;;  %v43_v38 = vadd.f32 %v234_v0, %v41_v34  ;;  %vm45_vm8 = vcmask 56368   ;;  %s115_s19 = sshll.u32 %s207_s1, 4  ;;  %s208_s23 = smov 128   ;;  %s116_s19 = int_to_ptr.vmem [resolvable:$true] %s115_s19 }
   0x8   :  { %24 = vst.msk [vmem:[#allocation2] sm:$0xff] %vm23_vm6, %v21_v32  ;;  %v44_v39 = vadd.f32 %v240_v5, %v42_v35  ;;  %vm50_vm9 = vcmask 64568   ;;  %s209_s24 = smov 8   ;;  %vm101_vm10 = vcmask 1041408   ;;  %s210_s2 = smov [#allocation4]   ;;  %vm109_vm11 = vcmask 0  }
   0x9   :  { %25 = vst.msk [vmem:[#allocation2 + $0x8] sm:$0xff] %vm23_vm6, %v22_v33  ;;  %s129_s25 = sshll.u32 %s210_s2, 4  ;;  %s131_s28 = sshll.u32 %s266_s3, 4  ;;  %s130_s25 = int_to_ptr.vmem [resolvable:$true] %s129_s25  ;;  %s132_s28 = int_to_ptr.hbm [resolvable:$true] %s131_s28 }
   0xa   :  { %35 = vst.msk [vmem:[#allocation2] sm:$0xff] %vm34_vm7, %v32_v36 }
   0xb   :  { %60 = vadd.xlane.f32.xlu0 %v59_v6  ;;  %36 = vst.msk [vmem:[#allocation2 + $0x8] sm:$0xff] %vm34_vm7, %v33_v37 }
   0xc   :  { %71 = vperm.xlu1 %150, %v64_v7   ;;  %46 = vst.msk [vmem:[#allocation2] sm:$0xff] %vm45_vm8, %v43_v38 }
   0xd   :  { %47 = vst.msk [vmem:[#allocation2 + $0x8] sm:$0xff] %vm45_vm8, %v44_v39 }
   0xe   :  { %51 = vst.msk [vmem:[#allocation2] sm:$0xff] %vm50_vm9, %v234_v0 }
   0xf   :  { %52 = vst.msk [vmem:[#allocation2 + $0x8] sm:$0xff] %vm50_vm9, %v240_v5 }
  0x10   :  { %123 = dma.vmem_to_hbm [thread:$0]  %s116_s19, 256, %s118_s22, [#allocation3], %s208_s23, %s208_s23, %s209_s24  }
  0x14   :  { %151 = vset.pattern.permute.xlu1 %v206_v8 }
  0x76   :  { %v58_v9 = vpop.xlane.xlu0 %57 }
  0x77   :  { %vm65_vm1 = vcmp.ne.f32.partialorder %v58_v9, 0.0 }
  0x7e   :  { %v61_v10 = vpop.xlane.xlu0 %60  ;;  %v72_v11 = vpop.permute.xlu1 %71 }
  0x7f   :  { %vm66_vm2 = vcmp.ne.f32.partialorder %v61_v10, 0.0  ;;  %v73_v12 = vsel %vm65_vm1, %v72_v11, 0 }
  0x80   :  { %v74_v13 = vsel %vm66_vm2, %v72_v11, 0  ;;  %76 = vperm.xlu1 %151, %v73_v12  }
  0x81   :  { %79 = vperm.xlu2 %152, %v74_v13  }
  0xdb   :  { %v80_v14 = vpop.permute.xlu2 %79 }
  0xdc   :  { %v82_v16 = vperm.slane %v80_v14, %v63_v4 }
  0xf2   :  { %v77_v15 = vpop.permute.xlu1 %76 }
  0xf3   :  { %v81_v17 = vperm.slane %v77_v15, %v63_v4 }
  0xf5   :  { %v84_v18 = vsel %vm83_vm3, %v82_v16, %v81_v17 }
  0xf6   :  { %v86_v19 = vsel %vm85_vm4, %v84_v18, 2147483648 }
  0xf7   :  { %v88_v20 = vshra.s32 %v86_v19, 16  ;;  %v87_v22 = vand.u32 65535, %v86_v19 }
  0xf9   :  { %v90_v21 = vcvt.s32.f32 %v88_v20  ;;  %v89_v24 = vcvt.s32.f32 %v87_v22 }
  0xfb   :  { %91 = vmax.xlane.f32.xlu2 %v90_v21 }
 0x16e   :  { %v92_v23 = vpop.xlane.xlu2 %91 }
 0x16f   :  { %vm93_vm5 = vcmp.eq.f32.partialorder %v90_v21, %v92_v23  ;;  %v98_v40 = vcvt.f32.s32 %v92_v23 }
 0x170   :  { %v94_v25 = vsel %vm93_vm5, %v89_v24, -inf }
 0x171   :  { %95 = vmax.xlane.f32.xlu0 %v94_v25  ;;  %v99_v42 = vshll.u32 %v98_v40, 16 }
 0x1e4   :  { %v96_v41 = vpop.xlane.xlu0 %95 }
 0x1e5   :  { %v97_v43 = vcvt.f32.s32 %v96_v41 }
 0x1e7   :  { %v100_v44 = vadd.s32 %v99_v42, %v97_v43 }
 0x1e9   :  { %v102_v45 = vsel %vm101_vm10, %v100_v44, 0 }
 0x1ea   :  { %v103_v46 = vrot.slane %v102_v45, 4 }
 0x1ec   :  { %v104_v47 = vadd.s32 %v103_v46, %v102_v45 }
 0x1ee   :  { %v105_v48 = vrot.slane %v104_v47, 2 }
 0x1f0   :  { %v106_v49 = vadd.s32 %v105_v48, %v104_v47 }
 0x1f2   :  { %v107_v50 = vrot.slane %v106_v49, 1 }
 0x1f4   :  { %v108_v51 = vadd.s32 %v107_v50, %v106_v49 }
 0x1f6   :  { %110 = vst.msk [vmem:[#allocation4] sm:$0x1] %vm109_vm11, %v108_v51 }
 0x1f7   :  { %134 = dma.vmem_to_hbm [thread:$0]  %s130_s25, 16, %s132_s28, [#allocation5]  }
 0x1f8   :  { %202 = dma.done.wait [#allocation3], 256  }
 0x1f9   :  { %203 = vsyncadd [#allocation3], 4294967040 }
 0x1fa   :  { %204 = dma.done.wait [#allocation5], 16  }
 0x1fb   :  { %205 = vsyncadd [#allocation5], 4294967280 }
 0x1fc   :  { %143 = vsyncpa [#allocation3], 1 }
 0x1fd   :  { %144 = vsyncpa [#allocation5], 1 }

</bundles_post_ra>
